<compile_context>
chip_gen: v7x
topology: tpu7x:2x2x1
jax: 0.10.0
libtpu: 0.0.40
codegen_flags: <defaults>
</compile_context>

<pallas_src>
import functools

import numpy as np
import jax
import jax.numpy as jnp
from jax import lax
from jax.experimental import pallas as pl
from jax.experimental.pallas import tpu as pltpu


# ---------------------------------------------------------------------------
# Buffer construction (mirrors the torch module's __init__).
# ---------------------------------------------------------------------------
def make_positional_encodings(max_len: int, d_model: int) -> jnp.ndarray:
    """PE table of shape (max_len, d_model), float32 (torch stores
    (max_len, 1, d_model); the batch axis is re-introduced by broadcasting)."""
    position = jnp.arange(max_len, dtype=jnp.float32)[:, None]               # (L, 1)
    div_term = jnp.exp(
        jnp.arange(0, d_model, 2, dtype=jnp.float32) * (-np.log(10000.0) / d_model)
    )                                                                         # (D/2,)
    angles = position * div_term                                              # (L, D/2)
    pe = jnp.zeros((max_len, d_model), dtype=jnp.float32)
    pe = pe.at[:, 0::2].set(jnp.sin(angles))
    pe = pe.at[:, 1::2].set(jnp.cos(angles))
    return pe


# ---------------------------------------------------------------------------
# Tiling helpers
# ---------------------------------------------------------------------------
def _round_up(v: int, m: int) -> int:
    return ((v + m - 1) // m) * m


def _choose_tile_s(S: int, B: int, D: int, itemsize: int) -> int:
    """One maximal sequence tile within a VMEM budget.

    Rounded to the dtype's sublane packing; capped at 1024 rows (HBM roofline
    saturates well before that) and at the (padded) sequence length.  No
    minimum-step-count cap: on single-TC chips extra grid steps are pure
    overhead, and the double-buffered block footprint stays <= ~16 MiB so it
    also fits v7x's smaller VMEM.
    """
    packing = max(8, 32 // max(itemsize, 1))          # 8 f32 / 16 bf16 / 32 int8
    wide = B * D
    # Per-row bytes of one grid step:
    #   x block + out block, double-buffered : 2 * 2 * wide * itemsize
    #   pe block (f32), double-buffered      : 2 * 4 * D
    #   in-kernel f32/i32 temporaries        : ~3 * 4 * wide
    row_bytes = 4 * wide * itemsize + 8 * D + 12 * wide
    budget = 8 * 1024 * 1024
    tile = budget // max(row_bytes, 1)
    tile = max(packing, (min(tile, 1024) // packing) * packing)
    return min(tile, _round_up(S, packing))


# ---------------------------------------------------------------------------
# Kernels
# ---------------------------------------------------------------------------
def _pe_add_kernel(x_ref, pe_ref, o_ref, *, batch):
    # x_ref / o_ref: (tile_s, B*D) lane-dense;  pe_ref: (tile_s, D) f32.
    # Replicate PE across batch once (lane concat), then ONE full-width
    # add and ONE full-width store.
    pe_wide = jnp.concatenate([pe_ref[...]] * batch, axis=-1)      # (tile_s, B*D)
    o_ref[...] = (x_ref[...].astype(jnp.float32) + pe_wide).astype(o_ref.dtype)


def _pe_add_dropout_kernel(seed_ref, x_ref, pe_ref, o_ref, *, p, batch):
    # Training-mode dropout: drop with prob p, scale survivors by 1/(1-p).
    tile_s, wide = o_ref.shape
    pe_wide = jnp.concatenate([pe_ref[...]] * batch, axis=-1)      # (tile_s, B*D)
    y = x_ref[...].astype(jnp.float32) + pe_wide

    # Portable counter-based hash PRNG (lowbias32-style mixing), int32 only.
    # Keyed on the *global* element index, so the mask is independent of the
    # tiling, and it lowers on TPU and in interpret mode (no pltpu.prng_*).
    row0 = pl.program_id(0) * tile_s
    rows = lax.broadcasted_iota(jnp.int32, (tile_s, wide), 0) + row0
    cols = lax.broadcasted_iota(jnp.int32, (tile_s, wide), 1)
    h = rows * jnp.int32(wide) + cols
    h = h ^ (seed_ref[0] * jnp.int32(-1640531527))                 # 0x9E3779B9
    h = h ^ lax.shift_right_logical(h, 16)
    h = h * jnp.int32(0x7FEB352D)
    h = h ^ lax.shift_right_logical(h, 15)
    h = h * jnp.int32(-2073319797)                                 # 0x846CA68B
    h = h ^ lax.shift_right_logical(h, 16)
    r31 = lax.shift_right_logical(h, 1)                            # uniform [0, 2^31)

    thresh = jnp.int32(min(int(round(p * 2147483648.0)), 2147483647))
    keep = r31 >= thresh
    inv_keep = jnp.float32(1.0 / (1.0 - p))
    o_ref[...] = jnp.where(keep, y * inv_keep, jnp.float32(0.0)).astype(o_ref.dtype)


# ---------------------------------------------------------------------------
# Wrapper
# ---------------------------------------------------------------------------
def positional_encoding_forward(
    x: jnp.ndarray,
    pe_table: jnp.ndarray,
    *,
    dropout_p: float = 0.1,
    training: bool = False,
    seed=0,
) -> jnp.ndarray:
    """x: (S, B, D).  pe_table: (max_len, D) float32.  Mirrors module.forward."""
    S, B, D = x.shape
    max_len = pe_table.shape[0]
    if S > max_len:
        raise ValueError(f"sequence length {S} exceeds max_len {max_len}")
    if training and dropout_p >= 1.0:
        return jnp.zeros_like(x)

    wide = B * D
    tile_s = _choose_tile_s(S, B, D, x.dtype.itemsize)
    grid = (pl.cdiv(S, tile_s),)          # ragged last block handled by Pallas

    # Lane-dense 2-D slab: (S, B*D) is a free row-major reshape of (S, B, D).
    x2 = x.reshape(S, wide)
    pe = pe_table.astype(jnp.float32)     # full table; only the needed blocks are DMA'd

    x_spec = pl.BlockSpec((tile_s, wide), lambda i, *_: (i, 0))
    pe_spec = pl.BlockSpec((tile_s, D), lambda i, *_: (i, 0))
    out_spec = pl.BlockSpec((tile_s, wide), lambda i, *_: (i, 0))
    out_shape = jax.ShapeDtypeStruct((S, wide), x.dtype)
    cparams = pltpu.CompilerParams(
        dimension_semantics=("parallel",),           # independent seq blocks (megacore)
        vmem_limit_bytes=32 * 1024 * 1024,           # explicit; safe on v5e/v6e/v7x
    )

    if (not training) or dropout_p == 0.0:
        out2 = pl.pallas_call(
            functools.partial(_pe_add_kernel, batch=B),
            out_shape=out_shape,
            grid_spec=pltpu.PrefetchScalarGridSpec(
                num_scalar_prefetch=0,
                grid=grid,
                in_specs=[x_spec, pe_spec],
                out_specs=out_spec,
            ),
            compiler_params=cparams,
        )(x2, pe)
    else:
        # Callers may pass a device int32 scalar/array to avoid a per-call H2D copy.
        seed_arr = jnp.asarray(seed, dtype=jnp.int32).reshape((1,))
        out2 = pl.pallas_call(
            functools.partial(_pe_add_dropout_kernel, p=float(dropout_p), batch=B),
            out_shape=out_shape,
            grid_spec=pltpu.PrefetchScalarGridSpec(
                num_scalar_prefetch=1,
                grid=grid,
                in_specs=[x_spec, pe_spec],
                out_specs=out_spec,
            ),
            compiler_params=cparams,
        )(seed_arr, x2, pe)

    return out2.reshape(S, B, D)


# ---------------------------------------------------------------------------
# Demo / self-test
# ---------------------------------------------------------------------------
if __name__ == "__main__":
    # seq_len deliberately not a multiple of 8 to exercise the ragged-block path.
    S, B, D = 12, 2, 32          # seq_len, batch, d_model
    MAX_LEN = 5000
    P = 0.1

    key = jax.random.PRNGKey(0)
    x = jax.random.normal(key, (S, B, D), dtype=jnp.float32)
    pe_table = make_positional_encodings(MAX_LEN, D)

    ref = np.asarray(x) + np.asarray(pe_table[:S])[:, None, :]

    # Eval mode (dropout == identity): exact match with the reference.
    y_eval = positional_encoding_forward(x, pe_table, dropout_p=P, training=False)
    y_eval = jax.block_until_ready(y_eval)
    np.testing.assert_allclose(np.asarray(y_eval), ref, rtol=1e-6, atol=1e-6)

    # Training mode: survivors equal (x + pe) / (1 - p); some elements are dropped.
    y_tr = positional_encoding_forward(x, pe_table, dropout_p=P, training=True, seed=1234)
    y_tr = np.asarray(jax.block_until_ready(y_tr))
    kept = y_tr != 0.0
    np.testing.assert_allclose(y_tr[kept], (ref / (1.0 - P))[kept], rtol=1e-5, atol=1e-5)
    dropped_frac = 1.0 - kept.mean()
    assert 0.0 < dropped_frac < 0.5, f"unexpected dropout fraction: {dropped_frac}"

    print("KERNEL_OK")
</pallas_src>

<mosaic_0001>
module attributes {stable_mosaic.version = 11 : i64} {
  func.func @_pe_add_kernel(%arg0: i32, %arg1: memref<16x64xf32, #tpu.memory_space<vmem>>, %arg2: memref<16x32xf32, #tpu.memory_space<vmem>>, %arg3: memref<16x64xf32, #tpu.memory_space<vmem>>) attributes {dimension_semantics = [#tpu.dimension_semantics<parallel>], iteration_bounds = array<i64: 1>, scalar_prefetch = 0 : i64, scratch_operands = 0 : i64, tpu.core_type = #tpu.core_type<tc>, window_params = [{transform_indices = @transform_0, window_bounds = array<i64: 16, 64>}, {transform_indices = @transform_1, window_bounds = array<i64: 16, 32>}, {transform_indices = @transform_2, window_bounds = array<i64: 16, 64>}]} {
    %c0 = arith.constant 0 : index
    %c0_0 = arith.constant 0 : index
    %0 = vector.load %arg2[%c0, %c0_0] : memref<16x32xf32, #tpu.memory_space<vmem>>, vector<16x32xf32>
    %1 = tpu.concatenate %0, %0 in 1 : vector<16x32xf32>, vector<16x32xf32> -> vector<16x64xf32>
    %c0_1 = arith.constant 0 : index
    %c0_2 = arith.constant 0 : index
    %2 = vector.load %arg1[%c0_1, %c0_2] : memref<16x64xf32, #tpu.memory_space<vmem>>, vector<16x64xf32>
    %3 = arith.addf %2, %1 : vector<16x64xf32>
    %c0_3 = arith.constant 0 : index
    %c0_4 = arith.constant 0 : index
    %4 = vector.load %arg3[%c0_3, %c0_4] : memref<16x64xf32, #tpu.memory_space<vmem>>, vector<16x64xf32>
    tpu.vector_store %arg3[%c0_3, %c0_4], %3 {strides = array<i32>} : memref<16x64xf32, #tpu.memory_space<vmem>>, vector<16x64xf32>,
    return
  }
  func.func @transform_0(%arg0: i32) -> (i32, i32) {
    %c0_i32 = arith.constant 0 : i32
    %c0_i32_0 = arith.constant 0 : i32
    return %arg0, %c0_i32 : i32, i32
  }
  func.func @transform_1(%arg0: i32) -> (i32, i32) {
    %c0_i32 = arith.constant 0 : i32
    %c0_i32_0 = arith.constant 0 : i32
    return %arg0, %c0_i32 : i32, i32
  }
  func.func @transform_2(%arg0: i32) -> (i32, i32) {
    %c0_i32 = arith.constant 0 : i32
    %c0_i32_0 = arith.constant 0 : i32
    return %arg0, %c0_i32 : i32, i32
  }
}

</mosaic_0001>

<bundles_post_ra>
// kernel: tpu_custom_call.1
= control target key start
LH: loop header
LB: loop body
LE: loop exit
PB: predicated region body
PF: predicated region fallthrough
CT: control target
= control target key end

     0   :  { %s76_s11 = smov 32   ;;  %s119_s0 = inlined_call_operand.vmem [shape: f32[12,64], index: 0, kind: input, shape index: {}]   ;;  %s120_s1 = inlined_call_operand.vmem [shape: f32[5000,32], index: 1, kind: input, shape index: {}]   ;;  %s121_s2 = inlined_call_operand.hbm [shape: f32[12,64], index: 2, kind: output, shape index: {}]  }
   0x1   :  { %v12_v0 = vld [vmem:[%s120_s1] sm:$0xff] }
   0x2   :  { %16 = vrot.lane.b32.xlu0 %v12_v0, %s76_s11 }
   0x3   :  { %7 = vsyncpa [#allocation3], 0  ;;  %v13_v1 = vld [vmem:[%s120_s1 + $0x8] sm:$0xff]  ;;  %vm22_vm0 = vcmask 261120   ;;  %v25_v2 = vld [vmem:[%s119_s0] sm:$0xff]  ;;  %vm29_vm1 = vcmask 523264  }
   0x4   :  { %v26_v6 = vld [vmem:[%s119_s0 + $0x8] sm:$0xff]  ;;  %s77_s18 = smov [#allocation2]  }
   0x5   :  { %s37_s19 = sshll.u32 %s77_s18, 4  ;;  %s38_s19 = int_to_ptr.vmem [resolvable:$true] %s37_s19 }
   0x6   :  { %18 = vrot.lane.b32.xlu0 %v13_v1, %s76_s11  ;;  %s52_s1 = scalar_lea.vmem %s38_s19, 256  ;;  %p57_p1 = scmp.lt.s32.totalorder %s38_s19, %s38_s19 }
   0x7   :  { %p53_p0 = scmp.ne.s32.totalorder %s38_s19, %s52_s1  ;;  %p58_p2 = scmp.lt.s32.totalorder %s52_s1, %s52_s1 }
   0x9   :  { %p59_p3 = por %p58_p2, %p57_p1 }
   0xb   :  { %p60_p4 = pnand %p59_p3, %p53_p0 }
  0x74   :  { %v17_v3 = vpop.permute.xlu0 %16 }
  0x75   :  { %v23_v4 = vsel %vm22_vm0, %v12_v0, %v17_v3 }
  0x76   :  { %v27_v5 = vadd.f32 %v25_v2, %v23_v4 }
  0x78   :  { %30 = vst.msk [vmem:[#allocation2] sm:$0xff] %vm29_vm1, %v27_v5  ;;  %v19_v7 = vpop.permute.xlu0 %18 }
  0x79   :  { %v24_v8 = vsel %vm22_vm0, %v13_v1, %v19_v7 }
  0x7a   :  { %v28_v9 = vadd.f32 %v26_v6, %v24_v8 }
  0x7c   :  { %31 = vst.msk [vmem:[#allocation2 + $0x8] sm:$0xff] %vm29_vm1, %v28_v9 }
  0x7d   :  { %63 = shalt.err (!%p60_p4)
}
  0x7e   :  { %s64_s22 = scalar_lea.hbm %s121_s2, 256 }
  0x7f   :  { %p65_p5 = scmp.ne.s32.totalorder %s121_s2, %s64_s22  ;;  %p68_p6 = scmp.lt.u32.totalorder %s64_s22, %s121_s2 }
  0x81   :  { %p70_p7 = pnand %p68_p6, %p65_p5 }
  0x83   :  { %73 = shalt.err (!%p70_p7)
}
  0x84   :  { %s78_s26 = smov 128   ;;  %s79_s27 = smov 8  }
  0x85   :  { %43 = dma.vmem_to_hbm [thread:$0]  %s38_s19, 256, %s121_s2, [#allocation3], %s78_s26, %s78_s26, %s79_s27  }
  0x86   :  { %74 = dma.done.wait [#allocation3], 256  }
  0x87   :  { %75 = vsyncadd [#allocation3], 4294967040 }
  0x88   :  { %47 = vsyncpa [#allocation3], 1 }

</bundles_post_ra>
